<compile_context>
chip_gen: v7x
topology: tpu7x:2x2x1
jax: 0.10.0
libtpu: 0.0.40
codegen_flags: <defaults>
</compile_context>

<pallas_src>
import jax
import jax.numpy as jnp
from jax.experimental import pallas as pl
from jax.experimental.pallas import tpu as pltpu


def user_embedding_kernel(x_ref, w0_ref, b0_ref, w1_ref, b1_ref,
                          w2_ref, b2_ref, wa_ref, ba_ref, o_ref):
    tb, S, D_in = x_ref.shape          # (TB, S, D_pad)
    E = o_ref.shape[-1]                # E_pad

    # Flatten the batch tile so each Linear layer is one tall MXU matmul.
    h = x_ref[...].reshape(tb * S, D_in)
    h = jnp.maximum(
        jnp.dot(h, w0_ref[...], preferred_element_type=jnp.float32) + b0_ref[...], 0.0)
    h = jnp.maximum(
        jnp.dot(h, w1_ref[...], preferred_element_type=jnp.float32) + b1_ref[...], 0.0)
    h = jnp.maximum(
        jnp.dot(h, w2_ref[...], preferred_element_type=jnp.float32) + b2_ref[...], 0.0)
    # h: (TB*S, E)

    # Per-batch view for the attention pooling (free regrouping when S % 8 == 0).
    h3 = h.reshape(tb, S, E)

    # Attention logits on VPU/XLU: broadcast-multiply + lane reduce instead of an
    # (M, E) @ (E, 1) matmul occupying a single MXU output column.
    logits = jnp.sum(h3 * wa_ref[...], axis=-1, keepdims=True) + ba_ref[...]  # (TB, S, 1)

    # Numerically-stable softmax over the sequence axis, then weighted sum.
    m = jnp.max(logits, axis=1, keepdims=True)
    e = jnp.exp(logits - m)
    attn = e * pl.reciprocal(jnp.sum(e, axis=1, keepdims=True), approx=False)  # (TB, S, 1)

    o_ref[...] = jnp.sum(attn * h3, axis=1)                                    # (TB, E)


def _round_up(n, m):
    return ((n + m - 1) // m) * m


def user_embedding(x, params, *, block_b=None):
    """x: (B, S, D_in) float32 -> (B, E) float32."""
    w0, b0, w1, b1, w2, b2, wa, ba = params
    B, S, D_in = x.shape
    E = w0.shape[1]

    LANE, SUB = 128, 8
    D_pad = _round_up(D_in, LANE)
    E_pad = _round_up(E, LANE)

    # Batch tile: multiple of 8 sublanes, aim for TB*S >= 128 matmul rows, but
    # keep >= 2 grid steps when the batch allows (megacore on v7x).
    if block_b is None:
        tb_rows = _round_up(max(1, pl.cdiv(128, S)), SUB)
        tb_two_steps = _round_up(pl.cdiv(B, 2), SUB)
        block_b = max(SUB, min(tb_rows, tb_two_steps))
    tb = block_b
    B_pad = _round_up(B, tb)

    f32 = jnp.float32
    # Zero-pad once in HBM; zero padding is mathematically inert for every layer
    # and for the attention pooling (padded output rows/cols are sliced off).
    xp = jnp.zeros((B_pad, S, D_pad), f32).at[:B, :, :D_in].set(x)
    w0p = jnp.zeros((D_pad, E_pad), f32).at[:D_in, :E].set(w0)
    w1p = jnp.zeros((E_pad, E_pad), f32).at[:E, :E].set(w1)
    w2p = jnp.zeros((E_pad, E_pad), f32).at[:E, :E].set(w2)
    b0p = jnp.zeros((1, E_pad), f32).at[:, :E].set(b0)
    b1p = jnp.zeros((1, E_pad), f32).at[:, :E].set(b1)
    b2p = jnp.zeros((1, E_pad), f32).at[:, :E].set(b2)
    wap = jnp.zeros((1, E_pad), f32).at[:, :E].set(wa.reshape(1, E))  # stored transposed
    bap = ba.reshape(1, 1).astype(f32)

    full = lambda shape: pl.BlockSpec(shape, lambda b: (0,) * len(shape))

    out = pl.pallas_call(
        user_embedding_kernel,
        out_shape=jax.ShapeDtypeStruct((B_pad, E_pad), f32),
        grid_spec=pltpu.PrefetchScalarGridSpec(
            num_scalar_prefetch=0,
            grid=(B_pad // tb,),
            in_specs=[
                pl.BlockSpec((tb, S, D_pad), lambda b: (b, 0, 0)),   # x tile
                full((D_pad, E_pad)), full((1, E_pad)),              # layer 0
                full((E_pad, E_pad)), full((1, E_pad)),              # layer 1
                full((E_pad, E_pad)), full((1, E_pad)),              # layer 2
                full((1, E_pad)), full((1, 1)),                      # attention (w^T, b)
            ],
            out_specs=pl.BlockSpec((tb, E_pad), lambda b: (b, 0)),
        ),
        compiler_params=pltpu.CompilerParams(
            dimension_semantics=("parallel",),
            vmem_limit_bytes=32 * 1024 * 1024,
        ),
    )(xp, w0p, b0p, w1p, b1p, w2p, b2p, wap, bap)

    return out[:B, :E]


def init_params(key, input_dim, embedding_dim):
    """Deterministic synthetic init (PyTorch-style U(-1/sqrt(fan_in), ..))."""
    def linear(k, fan_in, fan_out):
        kw, kb = jax.random.split(k)
        bound = 1.0 / jnp.sqrt(fan_in)
        w = jax.random.uniform(kw, (fan_in, fan_out), jnp.float32, -bound, bound)
        b = jax.random.uniform(kb, (1, fan_out), jnp.float32, -bound, bound)
        return w, b

    k0, k1, k2, ka = jax.random.split(key, 4)
    w0, b0 = linear(k0, input_dim, embedding_dim)
    w1, b1 = linear(k1, embedding_dim, embedding_dim)
    w2, b2 = linear(k2, embedding_dim, embedding_dim)
    wa, ba = linear(ka, embedding_dim, 1)
    return (w0, b0, w1, b1, w2, b2, wa, ba)


def reference(x, params):
    w0, b0, w1, b1, w2, b2, wa, ba = params
    h = jnp.maximum(x @ w0 + b0, 0.0)
    h = jnp.maximum(h @ w1 + b1, 0.0)
    h = jnp.maximum(h @ w2 + b2, 0.0)
    logits = h @ wa + ba                          # (B, S, 1)
    attn = jax.nn.softmax(logits, axis=1)
    return jnp.sum(attn * h, axis=1)              # (B, E)


if __name__ == "__main__":
    B, S, D_IN, E = 16, 8, 16, 32

    key = jax.random.PRNGKey(0)
    kx, kp = jax.random.split(key)
    x = jax.random.normal(kx, (B, S, D_IN), dtype=jnp.float32)
    params = init_params(kp, D_IN, E)

    fn = jax.jit(lambda xx: user_embedding(xx, params))
    out = jax.block_until_ready(fn(x))

    ref = reference(x, params)
    assert out.shape == (B, E)
    assert jnp.allclose(out, ref, atol=1e-4, rtol=1e-4)

    print("KERNEL_OK")
</pallas_src>

<mosaic_0001>
module attributes {stable_mosaic.version = 11 : i64} {
  func.func @user_embedding_kernel(%arg0: i32, %arg1: memref<8x8x128xf32, #tpu.memory_space<vmem>>, %arg2: memref<128x128xf32, #tpu.memory_space<vmem>>, %arg3: memref<1x128xf32, #tpu.memory_space<vmem>>, %arg4: memref<128x128xf32, #tpu.memory_space<vmem>>, %arg5: memref<1x128xf32, #tpu.memory_space<vmem>>, %arg6: memref<128x128xf32, #tpu.memory_space<vmem>>, %arg7: memref<1x128xf32, #tpu.memory_space<vmem>>, %arg8: memref<1x128xf32, #tpu.memory_space<vmem>>, %arg9: memref<1x1xf32, #tpu.memory_space<vmem>>, %arg10: memref<8x128xf32, #tpu.memory_space<vmem>>) attributes {dimension_semantics = [#tpu.dimension_semantics<parallel>], iteration_bounds = array<i64: 2>, scalar_prefetch = 0 : i64, scratch_operands = 0 : i64, tpu.core_type = #tpu.core_type<tc>, window_params = [{transform_indices = @transform_0, window_bounds = array<i64: 8, 8, 128>}, {pipeline_mode = #tpu.pipeline_mode<synchronous>, transform_indices = @transform_1, window_bounds = array<i64: 128, 128>}, {pipeline_mode = #tpu.pipeline_mode<synchronous>, transform_indices = @transform_2, window_bounds = array<i64: 1, 128>}, {pipeline_mode = #tpu.pipeline_mode<synchronous>, transform_indices = @transform_3, window_bounds = array<i64: 128, 128>}, {pipeline_mode = #tpu.pipeline_mode<synchronous>, transform_indices = @transform_4, window_bounds = array<i64: 1, 128>}, {pipeline_mode = #tpu.pipeline_mode<synchronous>, transform_indices = @transform_5, window_bounds = array<i64: 128, 128>}, {pipeline_mode = #tpu.pipeline_mode<synchronous>, transform_indices = @transform_6, window_bounds = array<i64: 1, 128>}, {pipeline_mode = #tpu.pipeline_mode<synchronous>, transform_indices = @transform_7, window_bounds = array<i64: 1, 128>}, {pipeline_mode = #tpu.pipeline_mode<synchronous>, transform_indices = @transform_8, window_bounds = array<i64: 1, 1>}, {transform_indices = @transform_9, window_bounds = array<i64: 8, 128>}]} {
    %c0 = arith.constant 0 : index
    %c0_0 = arith.constant 0 : index
    %c0_1 = arith.constant 0 : index
    %0 = vector.load %arg1[%c0, %c0_0, %c0_1] : memref<8x8x128xf32, #tpu.memory_space<vmem>>, vector<8x8x128xf32>
    %1 = vector.shape_cast %0 : vector<8x8x128xf32> to vector<64x128xf32>
    %c0_2 = arith.constant 0 : index
    %c0_3 = arith.constant 0 : index
    %2 = vector.load %arg2[%c0_2, %c0_3] : memref<128x128xf32, #tpu.memory_space<vmem>>, vector<128x128xf32>
    %cst = arith.constant dense<0.000000e+00> : vector<64x128xf32>
    %3 = tpu.matmul %1, %2, %cst {dimension_numbers = #tpu.dot_dimension_numbers<[1], [0], [0], [1], [0, 0, 1, 1], [], []>} : vector<64x128xf32>, vector<128x128xf32>, vector<64x128xf32> -> vector<64x128xf32>
    %c0_4 = arith.constant 0 : index
    %c0_5 = arith.constant 0 : index
    %4 = vector.load %arg3[%c0_4, %c0_5] : memref<1x128xf32, #tpu.memory_space<vmem>>, vector<1x128xf32>
    %5 = vector.broadcast %4 : vector<1x128xf32> to vector<64x128xf32>
    %6 = arith.addf %3, %5 : vector<64x128xf32>
    %cst_6 = arith.constant 0.000000e+00 : f32
    %7 = vector.broadcast %cst_6 : f32 to vector<64x128xf32>
    %8 = arith.maximumf %6, %7 : vector<64x128xf32>
    %c0_7 = arith.constant 0 : index
    %c0_8 = arith.constant 0 : index
    %9 = vector.load %arg4[%c0_7, %c0_8] : memref<128x128xf32, #tpu.memory_space<vmem>>, vector<128x128xf32>
    %cst_9 = arith.constant dense<0.000000e+00> : vector<64x128xf32>
    %10 = tpu.matmul %8, %9, %cst_9 {dimension_numbers = #tpu.dot_dimension_numbers<[1], [0], [0], [1], [0, 0, 1, 1], [], []>} : vector<64x128xf32>, vector<128x128xf32>, vector<64x128xf32> -> vector<64x128xf32>
    %c0_10 = arith.constant 0 : index
    %c0_11 = arith.constant 0 : index
    %11 = vector.load %arg5[%c0_10, %c0_11] : memref<1x128xf32, #tpu.memory_space<vmem>>, vector<1x128xf32>
    %12 = vector.broadcast %11 : vector<1x128xf32> to vector<64x128xf32>
    %13 = arith.addf %10, %12 : vector<64x128xf32>
    %cst_12 = arith.constant 0.000000e+00 : f32
    %14 = vector.broadcast %cst_12 : f32 to vector<64x128xf32>
    %15 = arith.maximumf %13, %14 : vector<64x128xf32>
    %c0_13 = arith.constant 0 : index
    %c0_14 = arith.constant 0 : index
    %16 = vector.load %arg6[%c0_13, %c0_14] : memref<128x128xf32, #tpu.memory_space<vmem>>, vector<128x128xf32>
    %cst_15 = arith.constant dense<0.000000e+00> : vector<64x128xf32>
    %17 = tpu.matmul %15, %16, %cst_15 {dimension_numbers = #tpu.dot_dimension_numbers<[1], [0], [0], [1], [0, 0, 1, 1], [], []>} : vector<64x128xf32>, vector<128x128xf32>, vector<64x128xf32> -> vector<64x128xf32>
    %c0_16 = arith.constant 0 : index
    %c0_17 = arith.constant 0 : index
    %18 = vector.load %arg7[%c0_16, %c0_17] : memref<1x128xf32, #tpu.memory_space<vmem>>, vector<1x128xf32>
    %19 = vector.broadcast %18 : vector<1x128xf32> to vector<64x128xf32>
    %20 = arith.addf %17, %19 : vector<64x128xf32>
    %cst_18 = arith.constant 0.000000e+00 : f32
    %21 = vector.broadcast %cst_18 : f32 to vector<64x128xf32>
    %22 = arith.maximumf %20, %21 : vector<64x128xf32>
    %23 = vector.shape_cast %22 : vector<64x128xf32> to vector<8x8x128xf32>
    %c0_19 = arith.constant 0 : index
    %c0_20 = arith.constant 0 : index
    %24 = vector.load %arg8[%c0_19, %c0_20] : memref<1x128xf32, #tpu.memory_space<vmem>>, vector<1x128xf32>
    %25 = vector.shape_cast %24 : vector<1x128xf32> to vector<1x1x128xf32>
    %26 = vector.broadcast %25 : vector<1x1x128xf32> to vector<8x8x128xf32>
    %27 = arith.mulf %23, %26 : vector<8x8x128xf32>
    %cst_21 = arith.constant dense<0.000000e+00> : vector<8x8xf32>
    %28 = vector.multi_reduction <add>, %27, %cst_21 [2] : vector<8x8x128xf32> to vector<8x8xf32>
    %29 = vector.shape_cast %28 : vector<8x8xf32> to vector<8x8x1xf32>
    %c0_22 = arith.constant 0 : index
    %c0_23 = arith.constant 0 : index
    %30 = vector.load %arg9[%c0_22, %c0_23] : memref<1x1xf32, #tpu.memory_space<vmem>>, vector<1x1xf32>
    %31 = vector.shape_cast %30 : vector<1x1xf32> to vector<1x1x1xf32>
    %32 = vector.broadcast %31 : vector<1x1x1xf32> to vector<8x8x1xf32>
    %33 = arith.addf %29, %32 : vector<8x8x1xf32>
    %cst_24 = arith.constant dense<0xFF800000> : vector<8x1xf32>
    %34 = vector.multi_reduction <maximumf>, %33, %cst_24 [1] : vector<8x8x1xf32> to vector<8x1xf32>
    %35 = vector.shape_cast %34 : vector<8x1xf32> to vector<8x1x1xf32>
    %36 = vector.broadcast %35 : vector<8x1x1xf32> to vector<8x8x1xf32>
    %37 = arith.subf %33, %36 : vector<8x8x1xf32>
    %38 = math.exp %37 : vector<8x8x1xf32>
    %cst_25 = arith.constant dense<0.000000e+00> : vector<8x1xf32>
    %39 = vector.multi_reduction <add>, %38, %cst_25 [1] : vector<8x8x1xf32> to vector<8x1xf32>
    %40 = vector.shape_cast %39 : vector<8x1xf32> to vector<8x1x1xf32>
    %41 = tpu.reciprocal %40 : vector<8x1x1xf32> -> vector<8x1x1xf32>
    %42 = vector.broadcast %41 : vector<8x1x1xf32> to vector<8x8x1xf32>
    %43 = arith.mulf %38, %42 : vector<8x8x1xf32>
    %44 = vector.broadcast %43 : vector<8x8x1xf32> to vector<8x8x128xf32>
    %45 = arith.mulf %44, %23 : vector<8x8x128xf32>
    %cst_26 = arith.constant dense<0.000000e+00> : vector<8x128xf32>
    %46 = vector.multi_reduction <add>, %45, %cst_26 [1] : vector<8x8x128xf32> to vector<8x128xf32>
    %c0_27 = arith.constant 0 : index
    %c0_28 = arith.constant 0 : index
    %47 = vector.load %arg10[%c0_27, %c0_28] : memref<8x128xf32, #tpu.memory_space<vmem>>, vector<8x128xf32>
    tpu.vector_store %arg10[%c0_27, %c0_28], %46 {strides = array<i32>} : memref<8x128xf32, #tpu.memory_space<vmem>>, vector<8x128xf32>,
    return
  }
  func.func @transform_0(%arg0: i32) -> (i32, i32, i32) {
    %c0_i32 = arith.constant 0 : i32
    %c0_i32_0 = arith.constant 0 : i32
    %c0_i32_1 = arith.constant 0 : i32
    return %arg0, %c0_i32, %c0_i32_0 : i32, i32, i32
  }
  func.func @transform_1(%arg0: i32) -> (i32, i32) {
    %c0_i32 = arith.constant 0 : i32
    %c0_i32_0 = arith.constant 0 : i32
    %c0_i32_1 = arith.constant 0 : i32
    return %c0_i32, %c0_i32_0 : i32, i32
  }
  func.func @transform_2(%arg0: i32) -> (i32, i32) {
    %c0_i32 = arith.constant 0 : i32
    %c0_i32_0 = arith.constant 0 : i32
    %c0_i32_1 = arith.constant 0 : i32
    return %c0_i32, %c0_i32_0 : i32, i32
  }
  func.func @transform_3(%arg0: i32) -> (i32, i32) {
    %c0_i32 = arith.constant 0 : i32
    %c0_i32_0 = arith.constant 0 : i32
    %c0_i32_1 = arith.constant 0 : i32
    return %c0_i32, %c0_i32_0 : i32, i32
  }
  func.func @transform_4(%arg0: i32) -> (i32, i32) {
    %c0_i32 = arith.constant 0 : i32
    %c0_i32_0 = arith.constant 0 : i32
    %c0_i32_1 = arith.constant 0 : i32
    return %c0_i32, %c0_i32_0 : i32, i32
  }
  func.func @transform_5(%arg0: i32) -> (i32, i32) {
    %c0_i32 = arith.constant 0 : i32
    %c0_i32_0 = arith.constant 0 : i32
    %c0_i32_1 = arith.constant 0 : i32
    return %c0_i32, %c0_i32_0 : i32, i32
  }
  func.func @transform_6(%arg0: i32) -> (i32, i32) {
    %c0_i32 = arith.constant 0 : i32
    %c0_i32_0 = arith.constant 0 : i32
    %c0_i32_1 = arith.constant 0 : i32
    return %c0_i32, %c0_i32_0 : i32, i32
  }
  func.func @transform_7(%arg0: i32) -> (i32, i32) {
    %c0_i32 = arith.constant 0 : i32
    %c0_i32_0 = arith.constant 0 : i32
    %c0_i32_1 = arith.constant 0 : i32
    return %c0_i32, %c0_i32_0 : i32, i32
  }
  func.func @transform_8(%arg0: i32) -> (i32, i32) {
    %c0_i32 = arith.constant 0 : i32
    %c0_i32_0 = arith.constant 0 : i32
    %c0_i32_1 = arith.constant 0 : i32
    return %c0_i32, %c0_i32_0 : i32, i32
  }
  func.func @transform_9(%arg0: i32) -> (i32, i32) {
    %c0_i32 = arith.constant 0 : i32
    %c0_i32_0 = arith.constant 0 : i32
    return %arg0, %c0_i32 : i32, i32
  }
}

</mosaic_0001>

<bundles_post_ra>
// kernel: _lambda_.1
= control target key start
LH: loop header
LB: loop body
LE: loop exit
PB: predicated region body
PF: predicated region fallthrough
CT: control target
= control target key end

     0   :  { %s2093_s0 = inlined_call_operand.vmem [shape: f32[16,8,128], index: 0, kind: input, shape index: {}]   ;;  %s2094_s1 = inlined_call_operand.hbm [shape: f32[128,128], index: 1, kind: input, shape index: {}]   ;;  %s2095_s2 = inlined_call_operand.vmem [shape: f32[1,128], index: 2, kind: input, shape index: {}]   ;;  %s2096_s3 = inlined_call_operand.vmem [shape: f32[128,128], index: 3, kind: input, shape index: {}]   ;;  %s2097_s4 = inlined_call_operand.vmem [shape: f32[1,128], index: 4, kind: input, shape index: {}]   ;;  %s2098_s5 = inlined_call_operand.vmem [shape: f32[128,128], index: 5, kind: input, shape index: {}]   ;;  %s2099_s6 = inlined_call_operand.vmem [shape: f32[1,128], index: 6, kind: input, shape index: {}]   ;;  %s2100_s7 = inlined_call_operand.vmem [shape: f32[1,128], index: 7, kind: input, shape index: {}]   ;;  %s2101_s8 = inlined_call_operand.<no memory space> [shape: f32[1,1], index: 8, kind: input, shape index: {}]   ;;  %s2102_s9 = inlined_call_operand.hbm [shape: f32[16,128], index: 9, kind: output, shape index: {}]  }
   0x1   :  { %v14_v0 = vstv %s2101_s8 }
   0x2   :  { %15 = vst [vmem:[#allocation2] sm:$0x1] %v14_v0 }
   0x3   :  { %16 = vsyncpa [#allocation4], 0 }
   0x4   :  { %17 = vsyncpa [#allocation5], 0 }
   0x5   :  { %19 = vsyncpa [#allocation5 + $0x1], 0  ;;  %s1745_s11 = smov 0   ;;  %s1747_s12 = smov 0  }
   0x6   :  { %s1749_s13 = smov 0   ;;  %s1751_s14 = smov 0  }
   0x7 LB: > { %s1766_s8 = sadd.s32 4294967295, %s1685_s14   ;;  %s1170_s15 = sadd.s32 4294967294, %s1685_s14   ;;  %s1685_s14 = sphi %s1751_s14, %s2118_s14   ;;  %s1681_s13 = sphi %s1749_s13, %s2117_s13   ;;  %s1677_s12 = sphi %s1747_s12, %s2116_s12   ;;  %s1673_s11 = sphi %s1745_s11, %s2115_s11  }
   0x8   : > { %s1770_s16 = sadd.s32 1, %s1685_s14   ;;  %s226_s17 = sadd.s32 1, %s1681_s13 }
   0x9   : > { %s223_s18 = ssub.s32 %s1685_s14, %s1770_s16  ;;  %p236_p0 = scmp.ne.s32.totalorder %s1681_s13, %s1677_s12 }
   0xa   : > { %p224_p1 = scmp.eq.s32.totalorder %s223_s18, 0  ;;  %p237_p2 = scmp.eq.s32.totalorder %s1766_s8, 1 }
   0xb   : > { %p242_p3 = scmp.ne.s32.totalorder %s1677_s12, %s1673_s11  ;;  %p243_p4 = scmp.eq.s32.totalorder %s1170_s15, 1 }
   0xc   : > { %s1781_s19 = scalar_select %p224_p1, %s1681_s13, %s226_s17  }
   0xd   : > { %p1783_p5 = por %p237_p2, %p236_p0  ;;  %p1787_p6 = por %p243_p4, %p242_p3 }
   0xe   : > { %p1171_p7 = scmp.ge.s32.totalorder %s1685_s14, 1  ;;  %p250_p8 = scmp.lt.s32.totalorder %s1685_s14, 3 }
   0xf   : > { %s2106_s20 = scalar_select %p1783_p5, 1, 0 }
  0x10   : > { %s2107_s21 = scalar_select %p1787_p6, 1, 0 }
  0x11   : > { %p2103_p9 = scmp.eq.s32.totalorder %s1766_s8, 0  ;;  %p1794_p10 = pnand %p1171_p7, %p250_p8 }
  0x12   : > { %s1687_s23 = smov [#allocation3]   ;;  %s1591_s28 = scalar_lea.hbm %s2094_s1, 2048 }
  0x13   : > { %s2108_s22 = scalar_select %p1794_p10, 1, 0 }
  0x14   : > { %s262_s24 = sshll.u32 %s1687_s23, 4  ;;  %p1510_p11 = pneg %p1794_p10  ;;  %s263_s24 = int_to_ptr.vmem [resolvable:$true] %s262_s24 }
  0x15   : > { %p1592_p13 = scmp.ne.s32.totalorder %s2094_s1, %s1591_s28  ;;  %p1598_p3 = scmp.lt.u32.totalorder %s1591_s28, %s2094_s1 }
  0x16   : > { %p1802_p12 = pnand %p2103_p9, %p1510_p11 }
  0x18   : > { %p1593_p0 = pneg %p1802_p12 }
  0x1a   : > { %p1594_p1 = pnand %p1593_p0, %p1592_p13 }
  0x1c   : > { %p1595_p2 = pneg %p1594_p1 }
  0x1e   : > { %p1600_p4 = pnand %p1598_p3, %p1595_p2 }
  0x20   : > { %1603 = shalt.err (!%p1600_p4)
}
  0x21   : > { %s1604_s17 = scalar_lea.vmem %s263_s24, 2048  ;;  %p1612_p9 = scmp.lt.s32.totalorder %s263_s24, %s263_s24 }
  0x22   : > { %p1605_p7 = scmp.ne.s32.totalorder %s263_s24, %s1604_s17  ;;  %p1613_p6 = scmp.lt.s32.totalorder %s1604_s17, %s1604_s17 }
  0x24   : > { %p1607_p8 = pnand %p1605_p7, %p1593_p0  ;;  %p1614_p5 = por %p1613_p6, %p1612_p9 }
  0x26   : > { %p1608_p11 = pneg %p1607_p8 }
  0x28   : > { %p1615_p10 = pnand %p1614_p5, %p1608_p11 }
  0x2a   : > { %1618 = shalt.err (!%p1615_p10)
}
  0x2b   : > { %s1688_s18 = smov 128   ;;  %s1689_s23 = smov 8  }
  0x2c   : > { %1513 = dma.hbm_to_vmem [thread:$0]  (!%p1802_p12), %s2094_s1, 2048, %s263_s24, [#allocation4], %s1688_s18, %s1688_s18, %s1689_s23  }
  0x2d   : > { %p2110_p13 = scmp.ne.s32.totalorder %s2108_s22, 0 }
  0x2e   : > { %p2111_p1 = scmp.eq.s32.totalorder (!%p2110_p13), %s1766_s8, 0 }
  0x2f   : > { %308 = sbr.rel (%p2110_p13) target bundleno = 1124 (0x464), region = 56 }
  0x36   : > { %1664 = dma.done.wait (%p2111_p1), [#allocation4], 2048   ;;  %p2112_p0 = pmov %p2111_p1 }
  0x37   : > { %s1177_s28 = sshll.u32 %s1766_s8, 3  ;;  %v358_v1 = vld [vmem:[#allocation3] sm:$0xff]  ;;  %v359_v2 = vld [vmem:[#allocation3 + $0x8] sm:$0xff]  ;;  %v360_v3 = vld [vmem:[#allocation3 + $0x10] sm:$0xff]  ;;  %vm812_vm0 = vcmask 7168   ;;  %vm1069_vm1 = vcmask 1041409  }
  0x38   : > { %1666 = vsyncadd (%p2112_p0), [#allocation4], 4294965248  ;;  %p345_p5 = scmp.lt.s32.totalorder %s1177_s28, 15  ;;  %v1392_v4 = vpack.c.bf16 %v359_v2, %v358_v1  ;;  %v361_v5 = vld [vmem:[#allocation3 + $0x18] sm:$0xff]  ;;  %v362_v7 = vld [vmem:[#allocation3 + $0x20] sm:$0xff]  ;;  %vm1071_vm2 = vcmask 1042434  }
  0x39   : > { %v1396_v6 = vpack.c.bf16 %v361_v5, %v360_v3  ;;  %v363_v8 = vld [vmem:[#allocation3 + $0x28] sm:$0xff]  ;;  %v364_v11 = vld [vmem:[#allocation3 + $0x30] sm:$0xff]  ;;  %v365_v12 = vld [vmem:[#allocation3 + $0x38] sm:$0xff]  ;;  %vm1073_vm3 = vcmask 1043459   ;;  %vm1075_vm4 = vcmask 1044484   ;;  %vm1077_vm5 = vcmask 1045509  }
  0x3a   : > { %s2120_s28 = smov (!%p345_p5, %s1177_s28), 15  ;;  %1393 = vmatprep.subr.bf16.mxu0 %v1392_v4  ;;  %v1400_v9 = vpack.c.bf16 %v363_v8, %v362_v7  ;;  %v494_v13 = vld [vmem:[%s2096_s3] sm:$0xff]  ;;  %v495_v14 = vld [vmem:[%s2096_s3 + $0x8] sm:$0xff]  ;;  %v496_v15 = vld [vmem:[%s2096_s3 + $0x10] sm:$0xff]  ;;  %v1404_v16 = vpack.c.bf16 %v365_v12, %v364_v11  ;;  %vm1079_vm6 = vcmask 1046534   ;;  %s1185_s24 = sshll.u32 %s1766_s8, 7 }
  0x3b   : > { %s1178_s29 = sshll.u32 %s2120_s28, 3  ;;  %1395 = vmatpush3.bf16.msra.mxu0 %v1392_v4  ;;  %v366_v17 = vld [vmem:[#allocation3 + $0x40] sm:$0xff]  ;;  %v1424_v18 = vpack.c.bf16 %v495_v14, %v494_v13  ;;  %v497_v19 = vld [vmem:[%s2096_s3 + $0x18] sm:$0xff]  ;;  %v367_v20 = vld [vmem:[#allocation3 + $0x48] sm:$0xff]  ;;  %vm1081_vm7 = vcmask 1047559   ;;  %s2049_s17 = scalar_lea.hbm %s2102_s9, %s1185_s24 }
  0x3c   : > { %s1832_s25 = scalar_lea.vmem %s2093_s0, %s1178_s29  ;;  %1397 = vmatprep.subr.bf16.mxu0 %v1396_v6  ;;  %v1428_v21 = vpack.c.bf16 %v497_v19, %v496_v15  ;;  %v498_v22 = vld [vmem:[%s2096_s3 + $0x20] sm:$0xff]  ;;  %v499_v23 = vld [vmem:[%s2096_s3 + $0x28] sm:$0xff]  ;;  %v1408_v24 = vpack.c.bf16 %v367_v20, %v366_v17  ;;  %v368_v25 = vld [vmem:[#allocation3 + $0x50] sm:$0xff]  ;;  %s341_s29 = sand.u32 1, %s1677_s12  }
  0x3d   : > { %v350_v10 = vld [vmem:[%s1832_s25] sm:$0xff]  ;;  %1425 = vmatprep.subr.bf16.mxu1 %v1424_v18  ;;  %v1432_v26 = vpack.c.bf16 %v499_v23, %v498_v22  ;;  %v500_v28 = vld [vmem:[%s2096_s3 + $0x30] sm:$0xff]  ;;  %v501_v29 = vld [vmem:[%s2096_s3 + $0x38] sm:$0xff]  ;;  %s1176_s22 = sshll.u32 %s341_s29, 3  ;;  %s1086_s8 = scalar_lea.sflag [#allocation5], %s341_s29 }
  0x3e   : > { %1292 = vmatprep.mubr.f32.mxu0 %v350_v10  ;;  %1427 = vmatpush3.bf16.msra.mxu1 %v1424_v18  ;;  %v369_v27 = vld [vmem:[#allocation3 + $0x58] sm:$0xff]  ;;  %v370_v31 = vld [vmem:[#allocation3 + $0x60] sm:$0xff]  ;;  %v1436_v32 = vpack.c.bf16 %v501_v29, %v500_v28  ;;  %v371_v33 = vld [vmem:[#allocation3 + $0x68] sm:$0xff]  ;;  %p2113_p9 = scmp.ne.s32.totalorder %s2106_s20, 0  ;;  %s1691_s23 = smov [#allocation6]  }
  0x3f   : > { %1399 = vmatpush3.bf16.msra.mxu0 %v1396_v6  ;;  %1429 = vmatprep.subr.bf16.mxu1 %v1428_v21  ;;  %v1412_v30 = vpack.c.bf16 %v369_v27, %v368_v25  ;;  %v502_v34 = vld [vmem:[%s2096_s3 + $0x40] sm:$0xff]  ;;  %v503_v35 = vld [vmem:[%s2096_s3 + $0x48] sm:$0xff]  ;;  %v1416_v36 = vpack.c.bf16 %v371_v33, %v370_v31  ;;  %v372_v37 = vld [vmem:[#allocation3 + $0x70] sm:$0xff]  ;;  %s1623_s26 = sshll.u32 %s1691_s23, 4  ;;  %s1624_s26 = int_to_ptr.vmem [resolvable:$false] %s1623_s26 }
  0x40   : > { %1401 = vmatprep.subr.bf16.mxu0 %v1400_v9  ;;  %v1440_v38 = vpack.c.bf16 %v503_v35, %v502_v34  ;;  %v373_v39 = vld [vmem:[#allocation3 + $0x78] sm:$0xff]  ;;  %v504_v40 = vld [vmem:[%s2096_s3 + $0x50] sm:$0xff]  ;;  %v507_v45 = vld [vmem:[%s2096_s3 + $0x68] sm:$0xff]  ;;  %s1625_s27 = scalar_lea.vmem %s1624_s26, 256 }
  0x41   : > { %v505_v41 = vld [vmem:[%s2096_s3 + $0x58] sm:$0xff]  ;;  %v1420_v42 = vpack.c.bf16 %v373_v39, %v372_v37  ;;  %v506_v44 = vld [vmem:[%s2096_s3 + $0x60] sm:$0xff]  ;;  %v351_v47 = vld [vmem:[%s1832_s25 + $0x8] sm:$0xff] }
  0x42   : > { %1431 = vmatpush3.bf16.msra.mxu1 %v1428_v21  ;;  %v1444_v43 = vpack.c.bf16 %v505_v41, %v504_v40  ;;  %v1448_v46 = vpack.c.bf16 %v507_v45, %v506_v44  ;;  %v352_v48 = vld [vmem:[%s1832_s25 + $0x10] sm:$0xff]  ;;  %v353_v49 = vld [vmem:[%s1832_s25 + $0x18] sm:$0xff]  ;;  %v354_v50 = vld [vmem:[%s1832_s25 + $0x20] sm:$0xff] }
  0x43   : > { %1403 = vmatpush3.bf16.msra.mxu0 %v1400_v9  ;;  %1433 = vmatprep.subr.bf16.mxu1 %v1432_v26  ;;  %v355_v51 = vld [vmem:[%s1832_s25 + $0x28] sm:$0xff]  ;;  %v356_v52 = vld [vmem:[%s1832_s25 + $0x30] sm:$0xff]  ;;  %v357_v53 = vld [vmem:[%s1832_s25 + $0x38] sm:$0xff]  ;;  %s343_s25 = scalar_lea.vmem [#allocation6], %s1176_s22 }
  0x44   : > { %1405 = vmatprep.subr.bf16.mxu0 %v1404_v16  ;;  %v508_v54 = vld [vmem:[%s2096_s3 + $0x70] sm:$0xff]  ;;  %v509_v55 = vld [vmem:[%s2096_s3 + $0x78] sm:$0xff]  ;;  %v630_v57 = vld [vmem:[%s2098_s5] sm:$0xff]  ;;  %s1099_s30 = sshll.u32 %s343_s25, 4  ;;  %s2051_s30 = int_to_ptr.vmem [resolvable:$true] %s1099_s30 }
  0x45   : > { %v1452_v56 = vpack.c.bf16 %v509_v55, %v508_v54  ;;  %v631_v58 = vld [vmem:[%s2098_s5 + $0x8] sm:$0xff]  ;;  %v632_v59 = vld [vmem:[%s2098_s5 + $0x10] sm:$0xff]  ;;  %v633_v61 = vld [vmem:[%s2098_s5 + $0x18] sm:$0xff]  ;;  %s1619_s18 = scalar_lea.vmem %s2051_s30, 128  ;;  %p1626_p2 = scmp.lt.s32.totalorder %s2051_s30, %s1624_s26 }
  0x46   : > { %1435 = vmatpush3.bf16.msra.mxu1 %v1432_v26  ;;  %v1456_v60 = vpack.c.bf16 %v631_v58, %v630_v57  ;;  %v1460_v62 = vpack.c.bf16 %v633_v61, %v632_v59  ;;  %v634_v63 = vld [vmem:[%s2098_s5 + $0x20] sm:$0xff]  ;;  %v635_v0 = vld [vmem:[%s2098_s5 + $0x28] sm:$0xff]  ;;  %v636_v2 = vld [vmem:[%s2098_s5 + $0x30] sm:$0xff]  ;;  %p1620_p6 = scmp.ne.s32.totalorder %s2051_s30, %s1619_s18  ;;  %p1627_p3 = scmp.lt.s32.totalorder %s1625_s27, %s1619_s18 }
  0x47   : > { %1407 = vmatpush3.bf16.msra.mxu0 %v1404_v16  ;;  %1437 = vmatprep.subr.bf16.mxu1 %v1436_v32  ;;  %v1464_v1 = vpack.c.bf16 %v635_v0, %v634_v63  ;;  %v637_v3 = vld [vmem:[%s2098_s5 + $0x38] sm:$0xff]  ;;  %v638_v5 = vld [vmem:[%s2098_s5 + $0x40] sm:$0xff]  ;;  %v639_v6 = vld [vmem:[%s2098_s5 + $0x48] sm:$0xff] }
  0x48   : > { %1409 = vmatprep.subr.bf16.mxu0 %v1408_v24  ;;  %v1468_v4 = vpack.c.bf16 %v637_v3, %v636_v2  ;;  %v1472_v7 = vpack.c.bf16 %v639_v6, %v638_v5  ;;  %v640_v8 = vld [vmem:[%s2098_s5 + $0x50] sm:$0xff]  ;;  %v641_v9 = vld [vmem:[%s2098_s5 + $0x58] sm:$0xff]  ;;  %v642_v11 = vld [vmem:[%s2098_s5 + $0x60] sm:$0xff]  ;;  %p1621_p10 = pnand %p1620_p6, %p2113_p9  ;;  %p1628_p4 = por %p1627_p3, %p1626_p2 }
  0x49   : > { %v1476_v10 = vpack.c.bf16 %v641_v9, %v640_v8  ;;  %v643_v12 = vld [vmem:[%s2098_s5 + $0x68] sm:$0xff]  ;;  %v1179_v14 = vld [vmem:[%s2095_s2] ss:$0 sm:$0xff]  ;;  %v644_v39 = vld [vmem:[%s2098_s5 + $0x70] sm:$0xff] }
  0x4a   : > { %1439 = vmatpush3.bf16.msra.mxu1 %v1436_v32  ;;  %v1480_v13 = vpack.c.bf16 %v643_v12, %v642_v11  ;;  %v645_v40 = vld [vmem:[%s2098_s5 + $0x78] sm:$0xff]  ;;  %v1181_v3 = vld [vmem:[%s2099_s6] ss:$0 sm:$0xff]  ;;  %p1622_p12 = pneg %p1621_p10 }
  0x4b   : > { %1411 = vmatpush3.bf16.msra.mxu0 %v1408_v24  ;;  %1441 = vmatprep.subr.bf16.mxu1 %v1440_v38  ;;  %v1484_v41 = vpack.c.bf16 %v645_v40, %v644_v39  ;;  %v1182_v8 = vld [vmem:[%s2100_s7] ss:$0 sm:$0xff] }
  0x4c   : > { %1413 = vmatprep.subr.bf16.mxu0 %v1412_v30  ;;  %p1629_p7 = pnand %p1628_p4, %p1622_p12 }
  0x4e   : > { %1443 = vmatpush3.bf16.msra.mxu1 %v1440_v38 }
  0x4f   : > { %1415 = vmatpush3.bf16.msra.mxu0 %v1412_v30  ;;  %1445 = vmatprep.subr.bf16.mxu1 %v1444_v43 }
  0x50   : > { %1417 = vmatprep.subr.bf16.mxu0 %v1416_v36 }
  0x52   : > { %1447 = vmatpush3.bf16.msra.mxu1 %v1444_v43 }
  0x53   : > { %1419 = vmatpush3.bf16.msra.mxu0 %v1416_v36  ;;  %1449 = vmatprep.subr.bf16.mxu1 %v1448_v46 }
  0x54   : > { %1421 = vmatprep.subr.bf16.mxu0 %v1420_v42 }
  0x56   : > { %1451 = vmatpush3.bf16.msra.mxu1 %v1448_v46 }
  0x57   : > { %1423 = vmatpush3.bf16.msra.mxu0 %v1420_v42  ;;  %1453 = vmatprep.subr.bf16.mxu1 %v1452_v56  ;;  %v1180_v42 = vld [vmem:[%s2097_s4] ss:$0 sm:$0xff] }
  0x58   : > { %1457 = vmatprep.subr.bf16.mxu0 %v1456_v60 }
  0x5a   : > { %1293 = vmatmul.mubr.f32.vlgmr.msra.gmra.mrb[0].mxu0 %v351_v47  ;;  %1455 = vmatpush3.bf16.msra.mxu1 %v1452_v56 }
  0x5b   : > { %1295 = vmatprep.mubr.f32.mxu0 %v352_v48  ;;  %1488 = vmatprep.subr.bf16.mxu1 %v1456_v60 }
  0x5c   : > { %1459 = vmatpush3.bf16.msra.mxu0 %v1456_v60 }
  0x5d   : > { %1461 = vmatprep.subr.bf16.mxu0 %v1460_v62 }
  0x5e   : > { %1296 = vmatmul.mubr.f32.gmra.mrb[2].mxu0 %v353_v49 }
  0x5f   : > { %1298 = vmatprep.mubr.f32.mxu0 %v354_v50 }
  0x60   : > { %1463 = vmatpush3.bf16.msra.mxu0 %v1460_v62 }
  0x61   : > { %1465 = vmatprep.subr.bf16.mxu0 %v1464_v1 }
  0x62   : > { %1299 = vmatmul.mubr.f32.gmra.mrb[4].mxu0 %v355_v51 }
  0x63   : > { %1301 = vmatprep.mubr.f32.mxu0 %v356_v52 }
  0x64   : > { %1467 = vmatpush3.bf16.msra.mxu0 %v1464_v1 }
  0x65   : > { %1469 = vmatprep.subr.bf16.mxu0 %v1468_v4 }
  0x66   : > { %1302 = vmatmul.mubr.f32.gmra.mrb[6].mxu0 %v357_v53 }
  0x68   : > { %1471 = vmatpush3.bf16.msra.mxu0 %v1468_v4 }
  0x69   : > { %1473 = vmatprep.subr.bf16.mxu0 %v1472_v7 }
  0x6c   : > { %1475 = vmatpush3.bf16.msra.mxu0 %v1472_v7 }
  0x6d   : > { %1477 = vmatprep.subr.bf16.mxu0 %v1476_v10 }
  0x70   : > { %1479 = vmatpush3.bf16.msra.mxu0 %v1476_v10 }
  0x71   : > { %1481 = vmatprep.subr.bf16.mxu0 %v1480_v13 }
  0x74   : > { %1483 = vmatpush3.bf16.msra.mxu0 %v1480_v13 }
  0x75   : > { %1485 = vmatprep.subr.bf16.mxu0 %v1484_v41 }
  0x78   : > { %1487 = vmatpush3.bf16.msra.mxu0 %v1484_v41 }
 0x12d   : > { %v1294_v15 = vpop.f32.mrb[0].mxu0 }
 0x12e   : > { %v453_v16 = vadd.f32 %v1294_v15, %v1179_v14  ;;  %v447_v17 = vpop.f32.mrb[1].mxu0 }
 0x12f   : > { %v448_v18 = vadd.f32 %v1179_v14, %v447_v17 }
 0x130   : > { %v487_v21 = vmax.f32 %v453_v16, 0.0 }
 0x131   : > { %v1297_v19 = vpop.f32.mrb[2].mxu0  ;;  %v486_v20 = vmax.f32 %v448_v18, 0.0 }
 0x132   : > { %v463_v22 = vadd.f32 %v1297_v19, %v1179_v14  ;;  %v457_v23 = vpop.f32.mrb[3].mxu0 }
 0x133   : > { %v458_v24 = vadd.f32 %v1179_v14, %v457_v23  ;;  %1336 = vmatprep.mubr.f32.mxu1 %v486_v20 }
 0x134   : > { %1337 = vmatmul.mubr.f32.vlgmr.msra.gmra.mrb[0].mxu1 %v487_v21  ;;  %v489_v27 = vmax.f32 %v463_v22, 0.0 }
 0x135   : > { %v488_v25 = vmax.f32 %v458_v24, 0.0  ;;  %v1300_v26 = vpop.f32.mrb[4].mxu0  ;;  %1496 = vmatpush3.bf16.msra.mxu1 %v1456_v60 }
 0x136   : > { %v473_v28 = vadd.f32 %v1300_v26, %v1179_v14  ;;  %v467_v29 = vpop.f32.mrb[5].mxu0  ;;  %1489 = vmatprep.subr.bf16.mxu1 %v1460_v62 }
 0x137   : > { %v468_v30 = vadd.f32 %v1179_v14, %v467_v29  ;;  %1339 = vmatprep.mubr.f32.mxu1 %v488_v25 }
 0x138   : > { %v491_v31 = vmax.f32 %v473_v28, 0.0  ;;  %1340 = vmatmul.mubr.f32.gmra.mrb[2].mxu1 %v489_v27 }
 0x139   : > { %v490_v32 = vmax.f32 %v468_v30, 0.0  ;;  %v1303_v33 = vpop.f32.mrb[6].mxu0  ;;  %1497 = vmatpush3.bf16.msra.mxu1 %v1460_v62 }
 0x13a   : > { %v483_v34 = vadd.f32 %v1303_v33, %v1179_v14  ;;  %v477_v35 = vpop.f32.mrb[7].mxu0  ;;  %1490 = vmatprep.subr.bf16.mxu1 %v1464_v1 }
 0x13b   : > { %v478_v36 = vadd.f32 %v1179_v14, %v477_v35  ;;  %1342 = vmatprep.mubr.f32.mxu1 %v490_v32 }
 0x13c   : > { %v493_v37 = vmax.f32 %v483_v34, 0.0  ;;  %1343 = vmatmul.mubr.f32.gmra.mrb[4].mxu1 %v491_v31 }
 0x13d   : > { %v492_v38 = vmax.f32 %v478_v36, 0.0  ;;  %1498 = vmatpush3.bf16.msra.mxu1 %v1464_v1 }
 0x13e   : > { %1491 = vmatprep.subr.bf16.mxu1 %v1468_v4 }
 0x13f   : > { %1345 = vmatprep.mubr.f32.mxu1 %v492_v38  ;;  %v1183_v38 = vld [vmem:[#allocation2] ss:$0 sm:$0xff] }
 0x140   : > { %1346 = vmatmul.mubr.f32.gmra.mrb[6].mxu1 %v493_v37  ;;  %v1690_v37 = vmov 0  }
 0x141   : > { %1499 = vmatpush3.bf16.msra.mxu1 %v1468_v4  ;;  %1558 = vset.pattern.permute.xlu1 %v1690_v37 }
 0x142   : > { %1492 = vmatprep.subr.bf16.mxu1 %v1472_v7  ;;  %1557 = vset.pattern.permute.xlu0 %v1690_v37 }
 0x145   : > { %1500 = vmatpush3.bf16.msra.mxu1 %v1472_v7 }
 0x146   : > { %1493 = vmatprep.subr.bf16.mxu1 %v1476_v10 }
 0x149   : > { %1501 = vmatpush3.bf16.msra.mxu1 %v1476_v10 }
 0x14a   : > { %1494 = vmatprep.subr.bf16.mxu1 %v1480_v13 }
 0x14d   : > { %1502 = vmatpush3.bf16.msra.mxu1 %v1480_v13 }
 0x14e   : > { %1495 = vmatprep.subr.bf16.mxu1 %v1484_v41 }
 0x151   : > { %1503 = vmatpush3.bf16.msra.mxu1 %v1484_v41 }
 0x207   : > { %v1338_v43 = vpop.f32.mrb[0].mxu1 }
 0x208   : > { %v589_v44 = vadd.f32 %v1338_v43, %v1180_v42  ;;  %v583_v45 = vpop.f32.mrb[1].mxu1 }
 0x209   : > { %v584_v46 = vadd.f32 %v1180_v42, %v583_v45 }
 0x20a   : > { %v623_v49 = vmax.f32 %v589_v44, 0.0 }
 0x20b   : > { %v622_v47 = vmax.f32 %v584_v46, 0.0  ;;  %v1341_v48 = vpop.f32.mrb[2].mxu1 }
 0x20c   : > { %v599_v50 = vadd.f32 %v1341_v48, %v1180_v42  ;;  %v593_v51 = vpop.f32.mrb[3].mxu1 }
 0x20d   : > { %v594_v52 = vadd.f32 %v1180_v42, %v593_v51  ;;  %1380 = vmatprep.mubr.f32.mxu0 %v622_v47 }
 0x20e   : > { %1381 = vmatmul.mubr.f32.vlgmr.msra.gmra.mrb[8].mxu0 %v623_v49  ;;  %v625_v55 = vmax.f32 %v599_v50, 0.0 }
 0x20f   : > { %v624_v53 = vmax.f32 %v594_v52, 0.0  ;;  %v1344_v54 = vpop.f32.mrb[4].mxu1 }
 0x210   : > { %v609_v56 = vadd.f32 %v1344_v54, %v1180_v42  ;;  %v603_v57 = vpop.f32.mrb[5].mxu1 }
 0x211   : > { %v604_v58 = vadd.f32 %v1180_v42, %v603_v57  ;;  %1383 = vmatprep.mubr.f32.mxu0 %v624_v53 }
 0x212   : > { %v627_v59 = vmax.f32 %v609_v56, 0.0  ;;  %1384 = vmatmul.mubr.f32.gmra.mrb[10].mxu0 %v625_v55 }
 0x213   : > { %v626_v60 = vmax.f32 %v604_v58, 0.0  ;;  %v1347_v61 = vpop.f32.mrb[6].mxu1 }
 0x214   : > { %v619_v62 = vadd.f32 %v1347_v61, %v1180_v42  ;;  %v613_v63 = vpop.f32.mrb[7].mxu1 }
 0x215   : > { %v614_v0 = vadd.f32 %v1180_v42, %v613_v63  ;;  %1386 = vmatprep.mubr.f32.mxu1 %v626_v60 }
 0x216   : > { %v629_v1 = vmax.f32 %v619_v62, 0.0  ;;  %1387 = vmatmul.mubr.f32.vlgmr.msra.gmra.mrb[8].mxu1 %v627_v59 }
 0x217   : > { %v628_v2 = vmax.f32 %v614_v0, 0.0 }
 0x219   : > { %1389 = vmatprep.mubr.f32.mxu1 %v628_v2 }
 0x21a   : > { %1390 = vmatmul.mubr.f32.gmra.mrb[10].mxu1 %v629_v1 }
 0x2e1   : > { %v1382_v4 = vpop.f32.mrb[8].mxu0 }
 0x2e2   : > { %v1947_v5 = vadd.f32 %v1382_v4, %v1181_v3  ;;  %v719_v6 = vpop.f32.mrb[9].mxu0 }
 0x2e3   : > { %v1949_v7 = vadd.f32 %v1181_v3, %v719_v6 }
 0x2e4   : > { %v759_v9 = vmax.f32 %v1947_v5, 0.0 }
 0x2e5   : > { %v1385_v10 = vpop.f32.mrb[10].mxu0  ;;  %v758_v11 = vmax.f32 %v1949_v7, 0.0 }
 0x2e6   : > { %v1956_v12 = vadd.f32 %v1385_v10, %v1181_v3  ;;  %v729_v13 = vpop.f32.mrb[11].mxu0  ;;  %v774_v14 = vmul.f32 %v1182_v8, %v759_v9 }
 0x2e7   : > { %v1960_v15 = vadd.f32 %v1181_v3, %v729_v13  ;;  %v773_v22 = vmul.f32 %v1182_v8, %v758_v11 }
 0x2e8   : > { %v761_v16 = vmax.f32 %v1956_v12, 0.0  ;;  %783 = vadd.xlane.f32.xlu0 %v774_v14 }
 0x2e9   : > { %v1388_v17 = vpop.f32.mrb[8].mxu1  ;;  %v760_v18 = vmax.f32 %v1960_v15, 0.0 }
 0x2ea   : > { %v1964_v19 = vadd.f32 %v1388_v17, %v1181_v3  ;;  %v739_v20 = vpop.f32.mrb[9].mxu1  ;;  %v776_v21 = vmul.f32 %v1182_v8, %v761_v16 }
 0x2eb   : > { %v1970_v23 = vadd.f32 %v1181_v3, %v739_v20  ;;  %v775_v29 = vmul.f32 %v1182_v8, %v760_v18 }
 0x2ec   : > { %787 = vadd.xlane.f32.xlu1 %v776_v21  ;;  %781 = vadd.xlane.f32.xlu0 %v773_v22  ;;  %v763_v26 = vmax.f32 %v1964_v19, 0.0 }
 0x2ed   : > { %v762_v24 = vmax.f32 %v1970_v23, 0.0  ;;  %v1391_v25 = vpop.f32.mrb[10].mxu1 }
 0x2ee   : > { %v1974_v27 = vadd.f32 %v1391_v25, %v1181_v3  ;;  %v749_v28 = vpop.f32.mrb[11].mxu1  ;;  %v778_v34 = vmul.f32 %v1182_v8, %v763_v26 }
 0x2ef   : > { %v1978_v30 = vadd.f32 %v1181_v3, %v749_v28  ;;  %v777_v31 = vmul.f32 %v1182_v8, %v762_v24 }
 0x2f0   : > { %v765_v32 = vmax.f32 %v1974_v27, 0.0  ;;  %785 = vadd.xlane.f32.xlu1 %v775_v29 }
 0x2f1   : > { %v764_v33 = vmax.f32 %v1978_v30, 0.0  ;;  %789 = vadd.xlane.f32.xlu0 %v777_v31 }
 0x2f2   : > { %v780_v36 = vmul.f32 %v1182_v8, %v765_v32 }
 0x2f3   : > { %v779_v35 = vmul.f32 %v1182_v8, %v764_v33 }
 0x2f4   : > { %791 = vadd.xlane.f32.xlu1 %v778_v34 }
 0x2f5   : > { %793 = vadd.xlane.f32.xlu0 %v779_v35 }
 0x2f8   : > { %795 = vadd.xlane.f32.xlu1 %v780_v36 }
 0x375   : > { %v784_v39 = vpop.xlane.xlu0 %783 }
 0x376   : > { %v805_v40 = vadd.f32 %v1183_v38, %v784_v39 }
 0x378   : > { %v820_v41 = vsel %vm812_vm0, %v805_v40, -inf }
 0x379   : > { %v821_v42 = vrot.slane %v820_v41, 4  ;;  %v788_v43 = vpop.xlane.xlu1 %787  ;;  %v782_v44 = vpop.xlane.xlu0 %781 }
 0x37a   : > { %v807_v45 = vadd.f32 %v1183_v38, %v788_v43  ;;  %v804_v46 = vadd.f32 %v1183_v38, %v782_v44 }
 0x37b   : > { %v822_v47 = vmax.f32 %v820_v41, %v821_v42 }
 0x37c   : > { %v834_v48 = vsel %vm812_vm0, %v807_v45, -inf  ;;  %v813_v49 = vsel %vm812_vm0, %v804_v46, -inf }
 0x37d   : > { %v823_v50 = vrot.slane %v822_v47, 2  ;;  %v835_v51 = vrot.slane %v834_v48, 4  ;;  %v814_v52 = vrot.slane %v813_v49, 4  ;;  %v786_v53 = vpop.xlane.xlu1 %785 }
 0x37e   : > { %v806_v54 = vadd.f32 %v1183_v38, %v786_v53  ;;  %v790_v55 = vpop.xlane.xlu0 %789 }
 0x37f   : > { %v824_v56 = vmax.f32 %v822_v47, %v823_v50  ;;  %v836_v57 = vmax.f32 %v834_v48, %v835_v51  ;;  %v815_v58 = vmax.f32 %v813_v49, %v814_v52  ;;  %v808_v59 = vadd.f32 %v1183_v38, %v790_v55 }
 0x380   : > { %v827_v60 = vsel %vm812_vm0, %v806_v54, -inf }
 0x381   : > { %v825_v61 = vrot.slane %v824_v56, 1  ;;  %v837_v62 = vrot.slane %v836_v57, 2  ;;  %v816_v63 = vrot.slane %v815_v58, 2  ;;  %v828_v0 = vrot.slane %v827_v60, 4  ;;  %v792_v1 = vpop.xlane.xlu1 %791 }
 0x382   : > { %v841_v2 = vsel %vm812_vm0, %v808_v59, -inf  ;;  %v809_v3 = vadd.f32 %v1183_v38, %v792_v1  ;;  %v794_v4 = vpop.xlane.xlu0 %793 }
 0x383   : > { %v826_v6 = vmax.f32 %v824_v56, %v825_v61  ;;  %v838_v8 = vmax.f32 %v836_v57, %v837_v62  ;;  %v817_v10 = vmax.f32 %v815_v58, %v816_v63  ;;  %v829_v13 = vmax.f32 %v827_v60, %v828_v0 }
 0x384   : > { %v842_v14 = vrot.slane %v841_v2, 4  ;;  %v848_v17 = vsel %vm812_vm0, %v809_v3, -inf  ;;  %v810_v20 = vadd.f32 %v1183_v38, %v794_v4 }
 0x385   : > { %v870_v21 = vsub.f32 %v805_v40, %v826_v6  ;;  %v839_v22 = vrot.slane %v838_v8, 1  ;;  %v818_v25 = vrot.slane %v817_v10, 1  ;;  %v830_v28 = vrot.slane %v829_v13, 2  ;;  %v796_v29 = vpop.xlane.xlu1 %795 }
 0x386   : > { %v843_v31 = vmax.f32 %v841_v2, %v842_v14  ;;  %v849_v34 = vrot.slane %v848_v17, 4  ;;  %v855_v35 = vsel %vm812_vm0, %v810_v20, -inf  ;;  %v811_v36 = vadd.f32 %v1183_v38, %v796_v29 }
 0x387   : > { %v879_v37 = vmul.f32 1.442695, %v870_v21  ;;  %v840_v39 = vmax.f32 %v838_v8, %v839_v22  ;;  %v819_v41 = vmax.f32 %v817_v10, %v818_v25  ;;  %v831_v42 = vmax.f32 %v829_v13, %v830_v28 }
 0x388   : > { %v844_v43 = vrot.slane %v843_v31, 2  ;;  %v850_v44 = vmax.f32 %v848_v17, %v849_v34  ;;  %v856_v47 = vrot.slane %v855_v35, 4  ;;  %v862_v48 = vsel %vm812_vm0, %v811_v36, -inf }
 0x389   : > { %1559 = vpow2.f32 %v879_v37  ;;  %v872_v40 = vsub.f32 %v807_v45, %v840_v39  ;;  %v869_v49 = vsub.f32 %v804_v46, %v819_v41  ;;  %v832_v50 = vrot.slane %v831_v42, 1 }
 0x38a   : > { %v845_v51 = vmax.f32 %v843_v31, %v844_v43  ;;  %v851_v52 = vrot.slane %v850_v44, 2  ;;  %v857_v53 = vmax.f32 %v855_v35, %v856_v47  ;;  %v863_v55 = vrot.slane %v862_v48, 4 }
 0x38b   : > { %v883_v56 = vmul.f32 1.442695, %v872_v40  ;;  %v877_v57 = vmul.f32 1.442695, %v869_v49  ;;  %v833_v38 = vmax.f32 %v831_v42, %v832_v50 }
 0x38c   : > { %v846_v58 = vrot.slane %v845_v51, 1  ;;  %v852_v60 = vmax.f32 %v850_v44, %v851_v52  ;;  %v858_v61 = vrot.slane %v857_v53, 2  ;;  %v864_v62 = vmax.f32 %v862_v48, %v863_v55 }
 0x38d   : > { %1561 = vpow2.f32 %v883_v56  ;;  %v871_v63 = vsub.f32 %v806_v54, %v833_v38 }
 0x38e   : > { %1563 = vpow2.f32 %v877_v57  ;;  %v847_v0 = vmax.f32 %v845_v51, %v846_v58  ;;  %v853_v1 = vrot.slane %v852_v60, 1  ;;  %v859_v2 = vmax.f32 %v857_v53, %v858_v61 }
 0x38f   : > { %v881_v45 = vmul.f32 1.442695, %v871_v63  ;;  %v865_v46 = vrot.slane %v864_v62, 2 }
 0x390   : > { %v873_v4 = vsub.f32 %v808_v59, %v847_v0  ;;  %v854_v6 = vmax.f32 %v852_v60, %v853_v1  ;;  %v860_v8 = vrot.slane %v859_v2, 1 }
 0x391   : > { %1565 = vpow2.f32 %v881_v45  ;;  %v866_v10 = vmax.f32 %v864_v62, %v865_v46 }
 0x392   : > { %v885_v13 = vmul.f32 1.442695, %v873_v4  ;;  %v874_v14 = vsub.f32 %v809_v3, %v854_v6  ;;  %v861_v17 = vmax.f32 %v859_v2, %v860_v8 }
 0x393   : > { %v1998_v21 = vpop.eup %1559  ;;  %v867_v22 = vrot.slane %v866_v10, 1 }
 0x394   : > { %v900_v54 = vsel %vm812_vm0, %v1998_v21, 0.0  ;;  %1567 = vpow2.f32 %v885_v13  ;;  %v887_v25 = vmul.f32 1.442695, %v874_v14  ;;  %v875_v28 = vsub.f32 %v810_v20, %v861_v17 }
 0x395   : > { %v901_v29 = vrot.slane %v900_v54, 4  ;;  %v868_v31 = vmax.f32 %v866_v10, %v867_v22 }
 0x396   : > { %1569 = vpow2.f32 %v887_v25  ;;  %v889_v59 = vmul.f32 1.442695, %v875_v28 }
 0x397   : > { %v2002_v34 = vpop.eup %1561  ;;  %v902_v35 = vadd.f32 %v901_v29, %v900_v54  ;;  %v876_v37 = vsub.f32 %v811_v36, %v868_v31 }
 0x398   : > { %v2004_v39 = vpop.eup %1563  ;;  %v914_v3 = vsel %vm812_vm0, %v2002_v34, 0.0  ;;  %1571 = vpow2.f32 %v889_v59 }
 0x399   : > { %v903_v41 = vrot.slane %v902_v35, 2  ;;  %v915_v42 = vrot.slane %v914_v3, 4  ;;  %v893_v43 = vsel %vm812_vm0, %v2004_v39, 0.0  ;;  %v891_v20 = vmul.f32 1.442695, %v876_v37 }
 0x39a   : > { %v894_v44 = vrot.slane %v893_v43, 4 }
 0x39b   : > { %v2010_v47 = vpop.eup %1565  ;;  %v916_v48 = vadd.f32 %v915_v42, %v914_v3  ;;  %1573 = vpow2.f32 %v891_v20  ;;  %v904_v40 = vadd.f32 %v903_v41, %v902_v35 }
 0x39c   : > { %v895_v49 = vadd.f32 %v894_v44, %v893_v43  ;;  %v907_v36 = vsel %vm812_vm0, %v2010_v47, 0.0 }
 0x39d   : > { %v917_v50 = vrot.slane %v916_v48, 2  ;;  %v908_v51 = vrot.slane %v907_v36, 4  ;;  %v905_v52 = vrot.slane %v904_v40, 1 }
 0x39e   : > { %v2014_v53 = vpop.eup %1567  ;;  %v896_v55 = vrot.slane %v895_v49, 2 }
 0x39f   : > { %v909_v56 = vadd.f32 %v908_v51, %v907_v36  ;;  %v921_v57 = vsel %vm812_vm0, %v2014_v53, 0.0  ;;  %v906_v38 = vadd.f32 %v905_v52, %v904_v40  ;;  %v918_v58 = vadd.f32 %v917_v50, %v916_v48 }
 0x3a0   : > { %v1570_v60 = vpop.eup %1569  ;;  %v922_v61 = vrot.slane %v921_v57, 4  ;;  %v897_v62 = vadd.f32 %v896_v55, %v895_v49 }
 0x3a1   : > { %v910_v63 = vrot.slane %v909_v56, 2  ;;  %v928_v0 = vsel %vm812_vm0, %v1570_v60, 0.0  ;;  %1575 = vrcp.f32 %v906_v38  ;;  %v919_v1 = vrot.slane %v918_v58, 1 }
 0x3a2   : > { %v1572_v2 = vpop.eup %1571  ;;  %v923_v45 = vadd.f32 %v922_v61, %v921_v57  ;;  %v929_v46 = vrot.slane %v928_v0, 4  ;;  %v898_v4 = vrot.slane %v897_v62, 1 }
 0x3a3   : > { %v935_v6 = vsel %vm812_vm0, %v1572_v2, 0.0  ;;  %v920_v8 = vadd.f32 %v919_v1, %v918_v58  ;;  %v911_v10 = vadd.f32 %v910_v63, %v909_v56 }
 0x3a4   : > { %v924_v13 = vrot.slane %v923_v45, 2  ;;  %v930_v14 = vadd.f32 %v929_v46, %v928_v0  ;;  %v936_v17 = vrot.slane %v935_v6, 4  ;;  %v899_v22 = vadd.f32 %v898_v4, %v897_v62 }
 0x3a5   : > { %v1574_v54 = vpop.eup %1573  ;;  %1577 = vrcp.f32 %v920_v8  ;;  %v912_v25 = vrot.slane %v911_v10, 1 }
 0x3a6   : > { %v931_v28 = vrot.slane %v930_v14, 2  ;;  %v937_v29 = vadd.f32 %v936_v17, %v935_v6  ;;  %v942_v31 = vsel %vm812_vm0, %v1574_v54, 0.0  ;;  %1579 = vrcp.f32 %v899_v22 }
 0x3a7   : > { %v943_v59 = vrot.slane %v942_v31, 4  ;;  %v913_v35 = vadd.f32 %v912_v25, %v911_v10  ;;  %v925_v37 = vadd.f32 %v924_v13, %v923_v45 }
 0x3a8   : > { %v938_v3 = vrot.slane %v937_v29, 2  ;;  %v932_v41 = vadd.f32 %v931_v28, %v930_v14 }
 0x3a9   : > { %v944_v42 = vadd.f32 %v943_v59, %v942_v31  ;;  %1581 = vrcp.f32 %v913_v35  ;;  %v926_v43 = vrot.slane %v925_v37, 1 }
 0x3aa   : > { %v933_v20 = vrot.slane %v932_v41, 1  ;;  %v939_v44 = vadd.f32 %v938_v3, %v937_v29 }
 0x3ab   : > { %v1576_v48 = vpop.eup %1575  ;;  %v945_v40 = vrot.slane %v944_v42, 2  ;;  %v927_v50 = vadd.f32 %v926_v43, %v925_v37 }
 0x3ac   : > { %v958_v49 = vmul.f32 %v1576_v48, %v1998_v21  ;;  %v934_v36 = vadd.f32 %v933_v20, %v932_v41  ;;  %v940_v51 = vrot.slane %v939_v44, 1 }
 0x3ad   : > { %v946_v52 = vadd.f32 %v945_v40, %v944_v42 }
 0x3ae   : > { %972 = vperm.xlu1 %1558, %v958_v49   ;;  %1583 = vrcp.f32 %v934_v36  ;;  %v941_v38 = vadd.f32 %v940_v51, %v939_v44 }
 0x3af   : > { %v1578_v55 = vpop.eup %1577  ;;  %1585 = vrcp.f32 %v927_v50  ;;  %v947_v58 = vrot.slane %v946_v52, 1 }
 0x3b0   : > { %v1580_v56 = vpop.eup %1579  ;;  %v960_v57 = vmul.f32 %v1578_v55, %v2002_v34  ;;  %1587 = vrcp.f32 %v941_v38 }
 0x3b1   : > { %v957_v61 = vmul.f32 %v1580_v56, %v2004_v39  ;;  %v948_v63 = vadd.f32 %v947_v58, %v946_v52 }
 0x3b2   : > { %982 = vperm.xlu1 %1558, %v960_v57  }
 0x3b3   : > { %v1582_v62 = vpop.eup %1581  ;;  %967 = vperm.xlu0 %1557, %v957_v61   ;;  %1589 = vrcp.f32 %v948_v63 }
 0x3b4   : > { %v959_v21 = vmul.f32 %v1582_v62, %v2010_v47 }
 0x3b6   : > { %977 = vperm.xlu1 %1558, %v959_v21  }
 0x3b8   : > { %v1584_v0 = vpop.eup %1583 }
 0x3b9   : > { %v962_v1 = vmul.f32 %v1584_v0, %v1570_v60  ;;  %v1586_v45 = vpop.eup %1585 }
 0x3ba   : > { %v961_v34 = vmul.f32 %v1586_v45, %v2014_v53  ;;  %v1588_v46 = vpop.eup %1587 }
 0x3bb   : > { %992 = vperm.xlu1 %1558, %v962_v1   ;;  %v963_v4 = vmul.f32 %v1588_v46, %v1572_v2 }
 0x3bd   : > { %v1590_v6 = vpop.eup %1589 }
 0x3be   : > { %v964_v39 = vmul.f32 %v1590_v6, %v1574_v54 }
 0x3bf   : > { %987 = vperm.xlu1 %1558, %v961_v34  }
 0x3c3   : > { %997 = vperm.xlu1 %1558, %v963_v4  }
 0x3c7   : > { %1002 = vperm.xlu1 %1558, %v964_v39  }
 0x42d   : > { %v973_v8 = vpop.permute.xlu1 %972 }
 0x42e   : > { %v1006_v47 = vmul.f32 %v973_v8, %v759_v9 }
 0x430   : > { %v1019_v14 = vrot.slane %v1006_v47, 4 }
 0x431   : > { %v983_v10 = vpop.permute.xlu1 %982 }
 0x432   : > { %v968_v13 = vpop.permute.xlu0 %967  ;;  %v1008_v53 = vmul.f32 %v983_v10, %v761_v16  ;;  %v1020_v25 = vadd.f32 %v1019_v14, %v1006_v47 }
 0x433   : > { %v1005_v60 = vmul.f32 %v968_v13, %v758_v11 }
 0x434   : > { %v1031_v28 = vrot.slane %v1008_v53, 4  ;;  %v1021_v11 = vrot.slane %v1020_v25, 2 }
 0x435   : > { %v1013_v17 = vrot.slane %v1005_v60, 4  ;;  %v978_v22 = vpop.permute.xlu1 %977 }
 0x436   : > { %v1007_v2 = vmul.f32 %v978_v22, %v760_v18  ;;  %v1032_v59 = vadd.f32 %v1031_v28, %v1008_v53  ;;  %v1022_v18 = vadd.f32 %v1021_v11, %v1020_v25 }
 0x437   : > { %v1014_v54 = vadd.f32 %v1013_v17, %v1005_v60 }
 0x438   : > { %v1025_v29 = vrot.slane %v1007_v2, 4  ;;  %v1033_v3 = vrot.slane %v1032_v59, 2 }
 0x439   : > { %v1015_v31 = vrot.slane %v1014_v54, 2 }
 0x43a   : > { %v1026_v5 = vadd.f32 %v1025_v29, %v1007_v2  ;;  %v993_v9 = vpop.permute.xlu1 %992  ;;  %v1034_v40 = vadd.f32 %v1033_v3, %v1032_v59 }
 0x43b   : > { %v1010_v7 = vmul.f32 %v993_v9, %v763_v26  ;;  %v1016_v37 = vadd.f32 %v1015_v31, %v1014_v54  ;;  %v1023_v26 = vrot.slane %v1022_v18, 1 }
 0x43c   : > { %v1027_v35 = vrot.slane %v1026_v5, 2  ;;  %v1035_v38 = vrot.slane %v1034_v40, 1 }
 0x43d   : > { %v1043_v12 = vrot.slane %v1010_v7, 4  ;;  %v1017_v44 = vrot.slane %v1016_v37, 1  ;;  %v1024_v57 = vadd.f32 %v1023_v26, %v1022_v18 }
 0x43e   : > { %v988_v16 = vpop.permute.xlu1 %987  ;;  %v1028_v41 = vadd.f32 %v1027_v35, %v1026_v5 }
 0x43f   : > { %v1009_v15 = vmul.f32 %v988_v16, %v762_v24  ;;  %v1044_v42 = vadd.f32 %v1043_v12, %v1010_v7  ;;  %v1018_v24 = vadd.f32 %v1017_v44, %v1016_v37 }
 0x440   : > { %v1029_v49 = vrot.slane %v1028_v41, 1 }
 0x441   : > { %v1037_v43 = vrot.slane %v1009_v15, 4  ;;  %v1045_v36 = vrot.slane %v1044_v42, 2  ;;  %v1070_v21 = vsel %vm1069_vm1, %v1024_v57, %v1018_v24 }
 0x442   : > { %v998_v20 = vpop.permute.xlu1 %997  ;;  %v1030_v30 = vadd.f32 %v1029_v49, %v1028_v41 }
 0x443   : > { %v1038_v48 = vadd.f32 %v1037_v43, %v1009_v15  ;;  %v1011_v19 = vmul.f32 %v998_v20, %v764_v33  ;;  %v1046_v33 = vadd.f32 %v1045_v36, %v1044_v42 }
 0x444   : > { %v1072_v1 = vsel %vm1071_vm2, %v1030_v30, %v1070_v21 }
 0x445   : > { %v1039_v50 = vrot.slane %v1038_v48, 2  ;;  %v1049_v51 = vrot.slane %v1011_v19, 4  ;;  %v1047_v45 = vrot.slane %v1046_v33, 1 }
 0x446   : > { %v1003_v23 = vpop.permute.xlu1 %1002 }
 0x447   : > { %v1040_v52 = vadd.f32 %v1039_v50, %v1038_v48  ;;  %v1050_v55 = vadd.f32 %v1049_v51, %v1011_v19  ;;  %v1012_v56 = vmul.f32 %v1003_v23, %v765_v32  ;;  %v1036_v32 = vadd.f32 %v1035_v38, %v1034_v40 }
 0x448   : > { %v1048_v47 = vadd.f32 %v1047_v45, %v1046_v33 }
 0x449   : > { %v1041_v58 = vrot.slane %v1040_v52, 1  ;;  %v1051_v61 = vrot.slane %v1050_v55, 2  ;;  %v1055_v62 = vrot.slane %v1012_v56, 4  ;;  %v1074_v4 = vsel %vm1073_vm3, %v1036_v32, %v1072_v1 }
 0x44b   : > { %v1052_v63 = vadd.f32 %v1051_v61, %v1050_v55  ;;  %v1056_v0 = vadd.f32 %v1055_v62, %v1012_v56  ;;  %v1042_v27 = vadd.f32 %v1041_v58, %v1040_v52 }
 0x44d   : > { %v1053_v34 = vrot.slane %v1052_v63, 1  ;;  %v1057_v46 = vrot.slane %v1056_v0, 2  ;;  %v1076_v39 = vsel %vm1075_vm4, %v1042_v27, %v1074_v4 }
 0x44e   : > { %v1078_v60 = vsel %vm1077_vm5, %v1048_v47, %v1076_v39 }
 0x44f   : > { %v1058_v6 = vadd.f32 %v1057_v46, %v1056_v0  ;;  %v1054_v8 = vadd.f32 %v1053_v34, %v1052_v63 }
 0x451   : > { %v1059_v10 = vrot.slane %v1058_v6, 1  ;;  %v1080_v14 = vsel %vm1079_vm6, %v1054_v8, %v1078_v60 }
 0x453   : > { %v1060_v13 = vadd.f32 %v1059_v10, %v1058_v6 }
 0x455   : > { %v1082_v53 = vsel %vm1081_vm7, %v1060_v13, %v1080_v14 }
 0x456   : > { %1084 = vst [vmem:[%s343_s25] sm:$0xff] %v1082_v53 }
 0x457   : > { %1632 = shalt.err (!%p1629_p7)
}
 0x458   : > { %s1633_s28 = scalar_lea.hbm %s2049_s17, 128  ;;  %s1637_s24 = scalar_lea.hbm %s2102_s9, 256 }
 0x459   : > { %p1634_p8 = scmp.ne.s32.totalorder %s2049_s17, %s1633_s28  ;;  %p1638_p1 = scmp.lt.u32.totalorder %s2049_s17, %s2102_s9 }
 0x45a   : > { %p1639_p0 = scmp.lt.u32.totalorder %s1637_s24, %s1633_s28  ;;  %p1641_p6 = scmp.lt.u32.totalorder %s1633_s28, %s2049_s17 }
 0x45b   : > { %p1635_p11 = pnand %p1634_p8, %p2113_p9 }
 0x45c   : > { %p1640_p5 = por %p1639_p0, %p1638_p1 }
 0x45d   : > { %p1636_p13 = pneg %p1635_p11 }
 0x45e   : > { %p1642_p10 = por %p1641_p6, %p1640_p5 }
 0x460   : > { %p1643_p12 = pnand %p1642_p10, %p1636_p13 }
 0x462   : > { %1646 = shalt.err (!%p1643_p12)
}
 0x463   : > { %1508 = dma.vmem_to_hbm [thread:$0]  (%p2113_p9), %s2051_s30, 128, %s2049_s17, %s1086_s8  }
 0x464 PF: > { %p1520_p2 = scmp.ge.s32.totalorder %s1685_s14, 2  ;;  %s1111_s15 = sand.u32 1, %s1673_s11  }
 0x465   : > { %p2114_p3 = scmp.ne.s32.totalorder %s2107_s21, 0  ;;  %s1112_s18 = scalar_lea.sflag [#allocation5], %s1111_s15 }
 0x467   : > { %p1515_p4 = pnand %p1520_p2, %p2114_p3 }
 0x469   : > { %1668 = dma.done.wait (!%p1515_p4), %s1112_s18, 128  }
 0x46a   : > { %1670 = vsyncadd (!%p1515_p4), %s1112_s18, 4294967168  ;;  %p22_p7 = scmp.ge.s32.totalorder %s1770_s16, 4   ;;  %s2115_s11 = smov %s1677_s12 }
 0x46b   : > { %s2116_s12 = smov %s1681_s13  ;;  %s2117_s13 = smov %s1781_s19 }
 0x46c   : > { %s2118_s14 = smov %s1770_s16  ;;  %24 = sbr.rel (!%p22_p7) target bundleno = 7 (0x7), region = 96 }
 0x473   :  { %1117 = vsyncpa [#allocation4], 1 }
 0x474   :  { %1119 = vsyncpa [#allocation4 + $0x1], 1 }
 0x475   :  { %1120 = vsyncpa [#allocation5], 1 }
 0x476   :  { %1122 = vsyncpa [#allocation5 + $0x1], 1 }

</bundles_post_ra>
